<compile_context>
chip_gen: v6e
topology: v6e:2x2x1
jax: 0.10.0
libtpu: 0.0.40
codegen_flags: <defaults>
</compile_context>

<pallas_src>
import jax
import jax.numpy as jnp
from jax.experimental import pallas as pl
from jax.experimental.pallas import tpu as pltpu


def _round_up(x, m):
    return ((x + m - 1) // m) * m


def gin_kernel(adj_ref, feat_ref, w_ref, b_ref, out_ref, acc_ref):
    """One (dst-tile i, src-tile k) grid step.

    adj_ref  : (tm, tk) bf16  adjacency tile ((1+eps) folded onto the diagonal)
    feat_ref : (tk, Di) bf16  src feature tile
    w_ref    : (Di, Do) f32   resident Linear weight (transposed)
    b_ref    : (1,  Do) f32   resident Linear bias
    out_ref  : (tm, Do) f32   output tile (written on the last k step)
    acc_ref  : (tm, Di) f32   VMEM accumulator, persists across k steps
    """
    k = pl.program_id(1)

    @pl.when(k == 0)
    def _init():
        acc_ref[...] = jnp.zeros_like(acc_ref)

    # Aggregation (+ (1+eps)*h via the folded diagonal): bf16 MXU, f32 accumulate.
    acc_ref[...] += jnp.dot(adj_ref[...], feat_ref[...],
                            preferred_element_type=jnp.float32)

    @pl.when(k == pl.num_programs(1) - 1)
    def _finalize():
        rst = acc_ref[...]
        # apply_func = nn.Linear: (tm, Di) @ (Di, Do) + b   [f32]
        out = jnp.dot(rst, w_ref[...], preferred_element_type=jnp.float32)
        out_ref[...] = (out + b_ref[...]).astype(out_ref.dtype)


def gin_conv(adj, feat, weight_t, bias, eps, *, aggregator="sum", tm=256, tk=256):
    """GINConv forward.

    adj      : (N, N) f32 dense adjacency, adj[dst, src] = 1.0 for edge src->dst
               (self-loops already added, as with dgl.add_self_loop).
    feat     : (N, D_in) f32 node features.
    weight_t : (D_in, D_out) f32 (PyTorch Linear weight, transposed).
    bias     : (D_out,) f32.
    eps      : python/scalar float.
    aggregator : 'sum' or 'mean'.
    """
    # TODO(synk): aggregator_type='max' needs a segment-max (no dense-matmul
    # form); only 'sum'/'mean' are implemented.  For genuinely sparse large
    # graphs a CSR scalar-prefetch gather formulation would replace the dense
    # adjacency matmul entirely.
    N, D_in = feat.shape
    assert adj.shape == (N, N)
    D_out = weight_t.shape[1]

    adj = adj.astype(jnp.float32)
    if aggregator == "mean":
        deg = jnp.sum(adj, axis=1, keepdims=True)
        adj = adj / jnp.maximum(deg, 1.0)
    elif aggregator != "sum":
        raise NotImplementedError("only 'sum'/'mean' aggregators supported")

    # Fold the (1 + eps) * h_dst term into the adjacency diagonal: the kernel
    # then computes rst = adj_eff @ feat in a single tiled reduction (no extra
    # dst-feat BlockSpec, no eps scalar plumbing, no VPU epilogue).
    adj_eff = adj + (1.0 + jnp.float32(eps)) * jnp.eye(N, dtype=jnp.float32)

    # Zero-pad to MXU / lane-friendly shapes.
    Nd = _round_up(N, tm)        # padded dst rows
    Ns = _round_up(N, tk)        # padded src rows (reduction)
    Di = _round_up(D_in, 128)    # lane-dense feature dim
    Do = _round_up(D_out, 128)   # lane-dense output dim

    adj_p = jnp.zeros((Nd, Ns), jnp.float32).at[:N, :N].set(adj_eff)
    adj_p = adj_p.astype(jnp.bfloat16)       # 0/1 (+ diag) values -> exact-ish, 2x less HBM
    feat_p = jnp.zeros((Ns, Di), jnp.float32).at[:N, :D_in].set(feat)
    feat_p = feat_p.astype(jnp.bfloat16)
    w_p = jnp.zeros((Di, Do), jnp.float32).at[:D_in, :D_out].set(weight_t)
    b_p = jnp.zeros((1, Do), jnp.float32).at[0, :D_out].set(bias)

    grid = (Nd // tm, Ns // tk)

    # VMEM budget: double-buffered streamed tiles + resident W/bias + accumulator.
    vmem_est = (2 * tm * tk * 2          # adj tiles   (bf16, 2 buffers)
                + 2 * tk * Di * 2        # feat tiles  (bf16, 2 buffers)
                + Di * Do * 4            # resident W  (f32)
                + 8 * Do * 4             # resident bias (sublane-padded)
                + 2 * tm * Do * 4        # out tiles   (f32, 2 buffers)
                + tm * Di * 4)           # accumulator scratch (f32)
    vmem_limit = min(max(int(1.5 * vmem_est), 32 * 1024 * 1024), 100 * 1024 * 1024)

    out_p = pl.pallas_call(
        gin_kernel,
        out_shape=jax.ShapeDtypeStruct((Nd, Do), jnp.float32),
        grid_spec=pltpu.PrefetchScalarGridSpec(
            num_scalar_prefetch=0,
            grid=grid,
            in_specs=[
                pl.BlockSpec((tm, tk), lambda i, k: (i, k)),    # adjacency tile
                pl.BlockSpec((tk, Di), lambda i, k: (k, 0)),    # src feature tile
                pl.BlockSpec((Di, Do), lambda i, k: (0, 0)),    # W^T (resident)
                pl.BlockSpec((1, Do), lambda i, k: (0, 0)),     # bias (resident)
            ],
            out_specs=pl.BlockSpec((tm, Do), lambda i, k: (i, 0)),
            scratch_shapes=[pltpu.VMEM((tm, Di), jnp.float32)],
        ),
        compiler_params=pltpu.CompilerParams(
            dimension_semantics=("parallel", "arbitrary"),
            vmem_limit_bytes=vmem_limit,
        ),
    )(adj_p, feat_p, w_p, b_p)

    return out_p[:N, :D_out]


def gin_conv_reference(adj, feat, weight_t, bias, eps, aggregator="sum"):
    """Exact f32 GINConv forward (mirrors the DGL module)."""
    if aggregator == "mean":
        deg = jnp.sum(adj, axis=1, keepdims=True)
        adj = adj / jnp.maximum(deg, 1.0)
    hi = jax.lax.Precision.HIGHEST
    neigh = jnp.dot(adj, feat, precision=hi)
    rst = (1.0 + eps) * feat + neigh
    return jnp.dot(rst, weight_t, precision=hi) + bias[None, :]


def gin_conv_reference_matched(adj, feat, weight_t, bias, eps, aggregator="sum"):
    """Reference with the same dtype pipeline as the kernel (bf16 aggregation
    inputs, f32 accumulation / f32 Linear) for a tight structural check."""
    if aggregator == "mean":
        deg = jnp.sum(adj, axis=1, keepdims=True)
        adj = adj / jnp.maximum(deg, 1.0)
    N = adj.shape[0]
    adj_eff = adj + (1.0 + jnp.float32(eps)) * jnp.eye(N, dtype=jnp.float32)
    rst = jnp.dot(adj_eff.astype(jnp.bfloat16), feat.astype(jnp.bfloat16),
                  preferred_element_type=jnp.float32)
    return jnp.dot(rst, weight_t, preferred_element_type=jnp.float32) + bias[None, :]


if __name__ == "__main__":
    key = jax.random.PRNGKey(0)
    k_adj, k_feat, k_w, k_b = jax.random.split(key, 4)

    # Small but non-trivial graph that exercises padding and the tiled k-reduction:
    # 300 nodes, ~5% edge density, self-loops added (dgl.add_self_loop).
    N, D_in, D_out = 300, 96, 80
    adj = (jax.random.uniform(k_adj, (N, N)) < 0.05).astype(jnp.float32)
    adj = jnp.maximum(adj, jnp.eye(N, dtype=jnp.float32))

    feat = jax.random.normal(k_feat, (N, D_in), dtype=jnp.float32)

    # apply_func = nn.Linear(D_in, D_out); PyTorch-style uniform init.
    bound = 1.0 / (D_in ** 0.5)
    weight = jax.random.uniform(k_w, (D_out, D_in), jnp.float32, -bound, bound)
    bias = jax.random.uniform(k_b, (D_out,), jnp.float32, -bound, bound)
    weight_t = weight.T  # (D_in, D_out)

    eps = 0.1
    aggregator = "sum"

    out = gin_conv(adj, feat, weight_t, bias, eps, aggregator=aggregator)
    out = jax.block_until_ready(out)
    assert out.shape == (N, D_out)

    ref_exact = gin_conv_reference(adj, feat, weight_t, bias, eps, aggregator)
    ref_match = gin_conv_reference_matched(adj, feat, weight_t, bias, eps, aggregator)

    scale = float(jnp.max(jnp.abs(ref_exact))) + 1e-6
    err_match = float(jnp.max(jnp.abs(out - ref_match))) / scale
    err_exact = float(jnp.max(jnp.abs(out - ref_exact))) / scale

    # Tight: same bf16-in / f32-accumulate pipeline -> verifies tiling / accumulation.
    assert err_match < 5e-3, f"matched-precision rel err = {err_match}"
    # Loose: against the exact f32 GINConv forward (bf16 aggregation inputs).
    assert err_exact < 2e-2, f"exact-reference rel err = {err_exact}"

    print("KERNEL_OK")
</pallas_src>

<mosaic_0001>
module attributes {stable_mosaic.version = 11 : i64} {
  func.func @gin_kernel(%arg0: i32, %arg1: i32, %arg2: memref<256x256xbf16, #tpu.memory_space<vmem>>, %arg3: memref<256x128xbf16, #tpu.memory_space<vmem>>, %arg4: memref<128x128xf32, #tpu.memory_space<vmem>>, %arg5: memref<1x128xf32, #tpu.memory_space<vmem>>, %arg6: memref<256x128xf32, #tpu.memory_space<vmem>>, %arg7: memref<256x128xf32, #tpu.memory_space<vmem>>) attributes {dimension_semantics = [#tpu.dimension_semantics<parallel>, #tpu.dimension_semantics<arbitrary>], iteration_bounds = array<i64: 2, 2>, scalar_prefetch = 0 : i64, scratch_operands = 1 : i64, tpu.core_type = #tpu.core_type<tc>, window_params = [{transform_indices = @transform_0, window_bounds = array<i64: 256, 256>}, {transform_indices = @transform_1, window_bounds = array<i64: 256, 128>}, {pipeline_mode = #tpu.pipeline_mode<synchronous>, transform_indices = @transform_2, window_bounds = array<i64: 128, 128>}, {pipeline_mode = #tpu.pipeline_mode<synchronous>, transform_indices = @transform_3, window_bounds = array<i64: 1, 128>}, {transform_indices = @transform_4, window_bounds = array<i64: 256, 128>}]} {
    %c0_i32 = arith.constant 0 : i32
    %0 = arith.cmpi eq, %arg1, %c0_i32 : i32
    %1 = arith.extui %0 : i1 to i32
    %c0_i32_0 = arith.constant 0 : i32
    %2 = arith.cmpi ne, %1, %c0_i32_0 : i32
    scf.if %2 {
      %cst_9 = arith.constant 0.000000e+00 : f32
      %12 = vector.broadcast %cst_9 : f32 to vector<256x128xf32>
      %c0_10 = arith.constant 0 : index
      %c0_11 = arith.constant 0 : index
      %13 = vector.load %arg7[%c0_10, %c0_11] : memref<256x128xf32, #tpu.memory_space<vmem>>, vector<256x128xf32>
      tpu.vector_store %arg7[%c0_10, %c0_11], %12 {strides = array<i32>} : memref<256x128xf32, #tpu.memory_space<vmem>>, vector<256x128xf32>,
    } else {
    }
    %c0 = arith.constant 0 : index
    %c0_1 = arith.constant 0 : index
    %3 = vector.load %arg7[%c0, %c0_1] : memref<256x128xf32, #tpu.memory_space<vmem>>, vector<256x128xf32>
    %c0_2 = arith.constant 0 : index
    %c0_3 = arith.constant 0 : index
    %4 = vector.load %arg2[%c0_2, %c0_3] : memref<256x256xbf16, #tpu.memory_space<vmem>>, vector<256x256xbf16>
    %c0_4 = arith.constant 0 : index
    %c0_5 = arith.constant 0 : index
    %5 = vector.load %arg3[%c0_4, %c0_5] : memref<256x128xbf16, #tpu.memory_space<vmem>>, vector<256x128xbf16>
    %cst = arith.constant dense<0.000000e+00> : vector<256x128xf32>
    %6 = tpu.matmul %4, %5, %cst {dimension_numbers = #tpu.dot_dimension_numbers<[1], [0], [0], [1], [0, 0, 1, 1], [], []>} : vector<256x256xbf16>, vector<256x128xbf16>, vector<256x128xf32> -> vector<256x128xf32>
    %7 = arith.addf %3, %6 : vector<256x128xf32>
    %c0_6 = arith.constant 0 : index
    %c0_7 = arith.constant 0 : index
    %8 = vector.load %arg7[%c0_6, %c0_7] : memref<256x128xf32, #tpu.memory_space<vmem>>, vector<256x128xf32>
    tpu.vector_store %arg7[%c0_6, %c0_7], %7 {strides = array<i32>} : memref<256x128xf32, #tpu.memory_space<vmem>>, vector<256x128xf32>,
    %c1_i32 = arith.constant 1 : i32
    %9 = arith.cmpi eq, %arg1, %c1_i32 : i32
    %10 = arith.extui %9 : i1 to i32
    %c0_i32_8 = arith.constant 0 : i32
    %11 = arith.cmpi ne, %10, %c0_i32_8 : i32
    scf.if %11 {
      %c0_9 = arith.constant 0 : index
      %c0_10 = arith.constant 0 : index
      %12 = vector.load %arg7[%c0_9, %c0_10] : memref<256x128xf32, #tpu.memory_space<vmem>>, vector<256x128xf32>
      %c0_11 = arith.constant 0 : index
      %c0_12 = arith.constant 0 : index
      %13 = vector.load %arg4[%c0_11, %c0_12] : memref<128x128xf32, #tpu.memory_space<vmem>>, vector<128x128xf32>
      %cst_13 = arith.constant dense<0.000000e+00> : vector<256x128xf32>
      %14 = tpu.matmul %12, %13, %cst_13 {dimension_numbers = #tpu.dot_dimension_numbers<[1], [0], [0], [1], [0, 0, 1, 1], [], []>} : vector<256x128xf32>, vector<128x128xf32>, vector<256x128xf32> -> vector<256x128xf32>
      %c0_14 = arith.constant 0 : index
      %c0_15 = arith.constant 0 : index
      %15 = vector.load %arg5[%c0_14, %c0_15] : memref<1x128xf32, #tpu.memory_space<vmem>>, vector<1x128xf32>
      %16 = vector.broadcast %15 : vector<1x128xf32> to vector<256x128xf32>
      %17 = arith.addf %14, %16 : vector<256x128xf32>
      %c0_16 = arith.constant 0 : index
      %c0_17 = arith.constant 0 : index
      %18 = vector.load %arg6[%c0_16, %c0_17] : memref<256x128xf32, #tpu.memory_space<vmem>>, vector<256x128xf32>
      tpu.vector_store %arg6[%c0_16, %c0_17], %17 {strides = array<i32>} : memref<256x128xf32, #tpu.memory_space<vmem>>, vector<256x128xf32>,
    } else {
    }
    return
  }
  func.func @transform_0(%arg0: i32, %arg1: i32) -> (i32, i32) {
    %c0_i32 = arith.constant 0 : i32
    return %arg0, %arg1 : i32, i32
  }
  func.func @transform_1(%arg0: i32, %arg1: i32) -> (i32, i32) {
    %c0_i32 = arith.constant 0 : i32
    %c0_i32_0 = arith.constant 0 : i32
    return %arg1, %c0_i32 : i32, i32
  }
  func.func @transform_2(%arg0: i32, %arg1: i32) -> (i32, i32) {
    %c0_i32 = arith.constant 0 : i32
    %c0_i32_0 = arith.constant 0 : i32
    %c0_i32_1 = arith.constant 0 : i32
    return %c0_i32, %c0_i32_0 : i32, i32
  }
  func.func @transform_3(%arg0: i32, %arg1: i32) -> (i32, i32) {
    %c0_i32 = arith.constant 0 : i32
    %c0_i32_0 = arith.constant 0 : i32
    %c0_i32_1 = arith.constant 0 : i32
    return %c0_i32, %c0_i32_0 : i32, i32
  }
  func.func @transform_4(%arg0: i32, %arg1: i32) -> (i32, i32) {
    %c0_i32 = arith.constant 0 : i32
    %c0_i32_0 = arith.constant 0 : i32
    return %arg0, %c0_i32 : i32, i32
  }
}

</mosaic_0001>

<bundles_post_ra>
// kernel: tpu_custom_call.1
= control target key start
LH: loop header
LB: loop body
LE: loop exit
PB: predicated region body
PF: predicated region fallthrough
CT: control target
= control target key end

     0   :  { %s2632_s0 = inlined_call_operand.hbm [shape: bf16[512,512], index: 0, kind: input, shape index: {}]   ;;  %s2633_s1 = inlined_call_operand.hbm [shape: bf16[512,128], index: 1, kind: input, shape index: {}]   ;;  %s2634_s2 = inlined_call_operand.hbm [shape: f32[128,128], index: 2, kind: input, shape index: {}]   ;;  %s2635_s3 = inlined_call_operand.vmem [shape: f32[1,128], index: 3, kind: input, shape index: {}]   ;;  %s2636_s4 = inlined_call_operand.hbm [shape: f32[512,128], index: 4, kind: output, shape index: {}]  }
   0x1   :  { %2657 = sst [smem:[#allocation24_spill]] %s2632_s0 }
   0x2   :  { %2658 = sst [smem:[#allocation25_spill]] %s2634_s2 }
   0x3   :  { %2659 = sst [smem:[#allocation26_spill]] %s2635_s3 }
   0x4   :  { %2660 = sst [smem:[#allocation27_spill]] %s2636_s4 }
   0x5   :  { %9 = vsyncpa [#allocation4], 0 }
   0x6   :  { %11 = vsyncpa [#allocation4 + $0x1], 0 }
   0x7   :  { %12 = vsyncpa [#allocation7], 0 }
   0x8   :  { %14 = vsyncpa [#allocation7 + $0x1], 0 }
   0x9   :  { %15 = vsyncpa [#allocation5], 0 }
   0xa   :  { %17 = vsyncpa [#allocation5 + $0x1], 0  ;;  %s2206_s15 = smov 0   ;;  %s2208_s16 = smov 0  }
   0xb   :  { %s2210_s17 = smov 0   ;;  %s2212_s18 = smov 0  }
   0xc   :  { %s2214_s19 = smov 0   ;;  %s2216_s20 = smov 0  }
   0xd   :  { %s2218_s21 = smov 0   ;;  %s2220_s22 = smov 0  }
   0xe   :  { %s2222_s23 = smov 0   ;;  %s2224_s24 = smov 0  }
   0xf   :  { %s2226_s25 = smov 0   ;;  %s2228_s26 = smov 0  }
  0x10   :  { %s2230_s27 = smov 0   ;;  %s2232_s28 = smov 0  }
  0x11 LB: > { %2661 = sst [smem:[#allocation14_spill]] %s2115_s15  ;;  %s2273_s29 = sadd.s32 4294967295, %s2167_s28   ;;  %s2167_s28 = sphi %s2232_s28, %s23_s28   ;;  %s2163_s27 = sphi %s2230_s27, %s2719_s27   ;;  %s2159_s26 = sphi %s2228_s26, %s2718_s26   ;;  %s2155_s25 = sphi %s2226_s25, %s2717_s25   ;;  %s2151_s24 = sphi %s2224_s24, %s2716_s24   ;;  %s2147_s23 = sphi %s2222_s23, %s2715_s23   ;;  %s2143_s22 = sphi %s2220_s22, %s2714_s22   ;;  %s2139_s21 = sphi %s2218_s21, %s2713_s21   ;;  %s2135_s20 = sphi %s2216_s20, %s2712_s20   ;;  %s2131_s19 = sphi %s2214_s19, %s2711_s19   ;;  %s2127_s18 = sphi %s2212_s18, %s2710_s18   ;;  %s2123_s17 = sphi %s2210_s17, %s2709_s17   ;;  %s2119_s16 = sphi %s2208_s16, %s2708_s16   ;;  %s2115_s15 = sphi %s2206_s15, %s2707_s15  }
  0x12   : > { %2662 = sst [smem:[#allocation15_spill]] %s2119_s16  ;;  %s1355_s30 = sadd.s32 4294967294, %s2167_s28  }
  0x13   : > { %2663 = sst [smem:[#allocation16_spill]] %s2151_s24  ;;  %p57_p0 = scmp.ne.s32.totalorder %s2143_s22, %s2139_s21 }
  0x14   : > { %2664 = sst [smem:[#allocation17_spill]] %s2155_s25  ;;  %p2655_p1 = scmp.eq.s32.totalorder %s2273_s29, 0 }
  0x15   : > { %2665 = sst [smem:[#allocation18_spill]] %s2273_s29  ;;  %p83_p2 = scmp.ne.s32.totalorder %s2131_s19, %s2127_s18 }
  0x16   : > { %p2282_p3 = por %p2655_p1, %p57_p0  ;;  %p148_p4 = scmp.ne.s32.totalorder %s2123_s17, %s2119_s16 }
  0x17   : > { %p2290_p5 = por %p83_p2, %p2655_p1  ;;  %p149_p6 = scmp.eq.s32.totalorder %s2273_s29, 3 }
  0x18   : > { %s2666_s6 = scalar_select %p2282_p3, 1, 0 }
  0x19   : > { %s2668_s7 = scalar_select %p2290_p5, 1, 0 }
  0x1a   : > { %2667 = sst [smem:[#allocation19_spill]] %s2666_s6  ;;  %p154_p7 = scmp.ne.s32.totalorder %s2119_s16, %s2115_s15 }
  0x1b   : > { %2669 = sst [smem:[#allocation20_spill]] %s2668_s7  ;;  %p155_p8 = scmp.eq.s32.totalorder %s1355_s30, 3 }
  0x1c   : > { %p2297_p9 = por %p149_p6, %p148_p4  ;;  %p1356_p10 = scmp.ge.s32.totalorder %s2167_s28, 1 }
  0x1d   : > { %p2302_p11 = por %p155_p8, %p154_p7  ;;  %p162_p12 = scmp.lt.s32.totalorder %s2167_s28, 5 }
  0x1e   : > { %s2670_s8 = scalar_select %p2297_p9, 1, 0 }
  0x1f   : > { %s2672_s9 = scalar_select %p2302_p11, 1, 0 }
  0x20   : > { %2671 = sst [smem:[#allocation21_spill]] %s2670_s8  ;;  %p2307_p13 = pnand %p1356_p10, %p162_p12 }
  0x21   : > { %2673 = sst [smem:[#allocation22_spill]] %s2672_s9  ;;  %s2169_s11 = smov [#allocation8]  }
  0x22   : > { %s174_s12 = sshll.u32 %s2169_s11, 4  ;;  %p1729_p0 = pneg %p2307_p13  ;;  %s175_s12 = int_to_ptr.vmem [resolvable:$true] %s174_s12 }
  0x23   : > { %s1944_s13 = scalar_lea.vmem %s175_s12, 2048  ;;  %p1952_p9 = scmp.lt.s32.totalorder %s175_s12, %s175_s12 }
  0x24   : > { %p1730_p2 = pnand %p1729_p0, %p2655_p1  ;;  %p1945_p6 = scmp.ne.s32.totalorder %s175_s12, %s1944_s13 }
  0x25   : > { %p1953_p11 = scmp.lt.s32.totalorder %s1944_s13, %s1944_s13 }
  0x26   : > { %p1935_p4 = pneg %p1730_p2 }
  0x27   : > { %p1954_p5 = por %p1953_p11, %p1952_p9 }
  0x28   : > { %p1947_p7 = pnand %p1945_p6, %p1935_p4 }
  0x2a   : > { %p1948_p8 = pneg %p1947_p7 }
  0x2c   : > { %p1955_p10 = pnand %p1954_p5, %p1948_p8 }
  0x2e   : > { %1958 = shalt.err (!%p1955_p10)
}
  0x2f   : > { %s2640_s14 = smov 128   ;;  %s2641_s18 = smov 8  }
  0x30   : > { %s2675_s2 = sld [smem:[#allocation25_spill]]  ;;  %s32_s11 = sadd.s32 1, %s2159_s26 }
  0x31   : > { %p33_p5 = scmp.ge.s32.totalorder %s32_s11, 2  ;;  %s35_s13 = sadd.s32 1, %s2163_s27 }
  0x32   : > { %s44_s5 = sadd.s32 1, %s2147_s23  ;;  %p51_p9 = scmp.ne.s32.totalorder %s2147_s23, %s2143_s22 }
  0x33   : > { %s2721_s11 = smov (%p33_p5, %s32_s11), 0  ;;  %s2723_s13 = smov (!%p33_p5, %s35_s13), %s2163_s27 }
  0x34   : > { %2676 = sst [smem:[#allocation23_spill]] %s2721_s11  ;;  %s2331_s9 = ssub.s32 %s2159_s26, %s2721_s11 }
  0x35   : > { %p2656_p11 = scmp.eq.s32.totalorder %s2167_s28, 0  ;;  %p37_p12 = scmp.ge.s32.totalorder %s2723_s13, 2 }
  0x36   : > { %1732 = dma.hbm_to_vmem [thread:$0]  (!%p1730_p2), %s2675_s2, 2048, %s175_s12, [#allocation7], %s2640_s14, %s2640_s14, %s2641_s18  }
  0x37   : > { %p68_p0 = scmp.eq.s32.totalorder %s2331_s9, 0  ;;  %p2337_p2 = por %p2656_p11, %p51_p9 }
  0x38   : > { %p1745_p4 = scmp.lt.s32.totalorder %s2167_s28, 4  ;;  %s2725_s13 = smov (%p37_p12, %s2723_s13), 0 }
  0x39   : > { %s191_s21 = sand.u32 1, %s2147_s23   ;;  %s1361_s30 = sshll.u32 %s2159_s26, 1 }
  0x3a   : > { %s39_s14 = ssub.s32 %s2163_s27, %s2725_s13  ;;  %s1359_s2 = sshll.u32 %s191_s21, 8 }
  0x3b   : > { %s41_s18 = sor.u32 %s2331_s9, %s39_s14  ;;  %p136_p6 = scmp.eq.s32.totalorder %s39_s14, 0 }
  0x3c   : > { %p42_p7 = scmp.eq.s32.totalorder %s41_s18, 0  ;;  %s2678_s11 = sadd.s32 1, %s2123_s17 }
  0x3d   : > { %s2352_s15 = scalar_select %p136_p6, %s2123_s17, %s2678_s11  }
  0x3e   : > { %s2355_s4 = scalar_select %p42_p7, %s2147_s23, %s44_s5  }
  0x3f   : > { %s1428_s8 = sshll.u32 %s2163_s27, 7  ;;  %s195_s3 = scalar_lea.vmem [#allocation3], %s1359_s2 }
  0x40   : > { %s202_s25 = sadd.s32 %s1428_s8, %s1361_s30  ;;  %s205_s24 = sshll.u32 %s195_s3, 4  ;;  %s206_s24 = int_to_ptr.vmem [resolvable:$true] %s205_s24 }
  0x41   : > { %s1363_s16 = sshll.u32 %s202_s25, 6  ;;  %s2679_s0 = sld [smem:[#allocation24_spill]] }
  0x42   : > { %p2365_p8 = pnand %p1745_p4, %p2337_p2  ;;  %s192_s18 = scalar_lea.sflag [#allocation4], %s191_s21 }
  0x43   : > { %s1972_s5 = scalar_lea.vmem %s206_s24, 4096  ;;  %s2172_s2 = smov [#allocation3]  }
  0x44   : > { %p1961_p10 = pneg %p2365_p8  ;;  %p1973_p5 = scmp.ne.s32.totalorder %s206_s24, %s1972_s5 }
  0x45   : > { %s1977_s3 = sshll.u32 %s2172_s2, 4  ;;  %s1978_s3 = int_to_ptr.vmem [resolvable:$false] %s1977_s3 }
  0x46   : > { %p1975_p9 = pnand %p1973_p5, %p1961_p10  ;;  %s1979_s25 = scalar_lea.vmem %s1978_s3, 8192 }
  0x47   : > { %s204_s6 = scalar_lea.hbm %s2679_s0, %s1363_s16  ;;  %p1980_p6 = scmp.lt.s32.totalorder %s206_s24, %s1978_s3 }
  0x48   : > { %p1976_p12 = pneg %p1975_p9  ;;  %p1981_p7 = scmp.lt.s32.totalorder %s1979_s25, %s1972_s5 }
  0x4a   : > { %p1982_p1 = por %p1981_p7, %p1980_p6 }
  0x4c   : > { %p1983_p11 = pnand %p1982_p1, %p1976_p12 }
  0x4e   : > { %1986 = shalt.err (!%p1983_p11)
}
  0x4f   : > { %s2173_s16 = smov 256   ;;  %s2681_s29 = smov 8  }
  0x50   : > { %s2682_s7 = smov 128   ;;  %s70_s8 = sadd.s32 1, %s2135_s20 }
  0x51   : > { %1736 = dma.hbm_to_vmem [thread:$0]  (!%p2365_p8), %s204_s6, 4096, %s206_s24, %s192_s18, %s2173_s16, %s2682_s7, %s2681_s29  }
  0x52   : > { %p77_p2 = scmp.ne.s32.totalorder %s2135_s20, %s2131_s19  ;;  %p2683_p1 = scmp.eq.s32.totalorder %s2167_s28, 0 }
  0x53   : > { %s2381_s11 = scalar_select %p68_p0, %s2135_s20, %s70_s8  }
  0x54   : > { %p79_p11 = por %p77_p2, %p2683_p1  ;;  %s215_s12 = sand.u32 1, %s2167_s28  }
  0x55   : > { %s217_s21 = sand.u32 1, %s2135_s20   ;;  %s1429_s14 = sshll.u32 %s2159_s26, 11 }
  0x56   : > { %s1364_s30 = sshll.u32 %s217_s21, 7  ;;  %s225_s3 = scalar_lea.hbm %s2633_s1, %s1429_s14 }
  0x57   : > { %s219_s25 = scalar_lea.vmem [#allocation6], %s1364_s30  ;;  %p2393_p10 = pnand %p1745_p4, %p79_p11 }
  0x58   : > { %s226_s0 = sshll.u32 %s219_s25, 4  ;;  %s216_s6 = scalar_lea.sflag [#allocation7], %s215_s12  ;;  %s227_s0 = int_to_ptr.vmem [resolvable:$true] %s226_s0 }
  0x59   : > { %p1989_p0 = pneg %p2393_p10  ;;  %s2000_s9 = scalar_lea.vmem %s227_s0, 2048 }
  0x5a   : > { %p2001_p8 = scmp.ne.s32.totalorder %s227_s0, %s2000_s9  ;;  %s2174_s18 = smov [#allocation6]  }
  0x5b   : > { %s2005_s16 = sshll.u32 %s2174_s18, 4  ;;  %s2006_s16 = int_to_ptr.vmem [resolvable:$false] %s2005_s16 }
  0x5c   : > { %p2003_p5 = pnand %p2001_p8, %p1989_p0  ;;  %s2007_s29 = scalar_lea.vmem %s2006_s16, 4096 }
  0x5d   : > { %p2008_p12 = scmp.lt.s32.totalorder %s227_s0, %s2006_s16  ;;  %p2009_p6 = scmp.lt.s32.totalorder %s2007_s29, %s2000_s9 }
  0x5e   : > { %p2004_p9 = pneg %p2003_p5 }
  0x5f   : > { %p2010_p7 = por %p2009_p6, %p2008_p12 }
  0x61   : > { %p2011_p4 = pnand %p2010_p7, %p2004_p9 }
  0x63   : > { %2014 = shalt.err (!%p2011_p4)
}
  0x64   : > { %s2175_s7 = smov 64   ;;  %s2176_s8 = smov 4  }
  0x65   : > { %1739 = dma.hbm_to_vmem [thread:$0]  (!%p2393_p10), %s225_s3, 2048, %s227_s0, %s216_s6, %s2175_s7, %s2175_s7, %s2176_s8  }
  0x66   : > { %238 = sbr.rel (%p2307_p13) target bundleno = 733 (0x2dd), region = 36  ;;  %s240_s21 = sand.u32 (!%p2307_p13), 1, %s2143_s22  }
  0x67   : > { %s1368_s30 = sshll.u32 (!%p2307_p13), %s240_s21, 8  ;;  %s241_s14 = scalar_lea.sflag (!%p2307_p13), [#allocation4], %s240_s21 }
  0x68   : > { %s2404_s5 = scalar_lea.vmem (!%p2307_p13), [#allocation3], %s1368_s30 }
  0x6b   : > { %2098 = dma.done.wait (%p2282_p3), %s241_s14, 4096  }
  0x6c   : > { %2100 = vsyncadd (%p2282_p3), %s241_s14, 4294963200  ;;  %s2686_s2 = sld [smem:[#allocation18_spill]]  ;;  %s251_s0 = sand.u32 1, %s2131_s19  }
  0x6d   : > { %s2687_s25 = sld [smem:[#allocation20_spill]]  ;;  %s1369_s3 = sshll.u32 %s251_s0, 7 }
  0x6e   : > { %s2412_s6 = scalar_lea.vmem [#allocation6], %s1369_s3 }
  0x72   : > { %s249_s24 = sand.u32 1, %s2686_s2  }
  0x73   : > { %s250_s10 = scalar_lea.sflag [#allocation7], %s249_s24  ;;  %p2688_p13 = scmp.ne.s32.totalorder %s2687_s25, 0 }
  0x75   : > { %2102 = dma.done.wait (%p2688_p13), %s250_s10, 2048  }
  0x76   : > { %2104 = vsyncadd (%p2688_p13), %s250_s10, 4294965248  ;;  %p2689_p2 = scmp.eq.s32.totalorder %s2686_s2, 0 }
  0x78   : > { %2106 = dma.done.wait (%p2689_p2), [#allocation7], 2048   ;;  %p2690_p1 = pmov %p2689_p2 }
  0x79   : > { %s2691_s9 = sld [smem:[#allocation15_spill]] }
  0x7a   : > { %2108 = vsyncadd (%p2690_p1), [#allocation7], 4294965248  ;;  %s2692_s7 = sld [smem:[#allocation16_spill]] }
  0x7f   : > { %s284_s18 = sand.u32 1, %s2691_s9  }
  0x80   : > { %s1371_s16 = sshll.u32 %s284_s18, 8  ;;  %p1372_p3 = scmp.ne.s32.totalorder %s2692_s7, 0 }
  0x81   : > { %s2425_s29 = scalar_lea.vmem [#allocation9], %s1371_s16 }
  0x82   : > { %295 = sbr.rel (%p1372_p3) target bundleno = 152 (0x98), region = 52 }
  0x87   : > { %v2177_v0 = vmov 0.0  }
  0x88   : > { %296 = vst [vmem:[#allocation2 + $0xb0] sm:$0xff] %v2177_v0  ;;  %297 = vst [vmem:[#allocation2] sm:$0xff] %v2177_v0 }
  0x89   : > { %298 = vst [vmem:[#allocation2 + $0xd8] sm:$0xff] %v2177_v0  ;;  %299 = vst [vmem:[#allocation2 + $0x18] sm:$0xff] %v2177_v0 }
  0x8a   : > { %300 = vst [vmem:[#allocation2 + $0x50] sm:$0xff] %v2177_v0  ;;  %301 = vst [vmem:[#allocation2 + $0x68] sm:$0xff] %v2177_v0 }
  0x8b   : > { %302 = vst [vmem:[#allocation2 + $0x30] sm:$0xff] %v2177_v0  ;;  %303 = vst [vmem:[#allocation2 + $0x48] sm:$0xff] %v2177_v0 }
  0x8c   : > { %304 = vst [vmem:[#allocation2 + $0x80] sm:$0xff] %v2177_v0  ;;  %305 = vst [vmem:[#allocation2 + $0x88] sm:$0xff] %v2177_v0 }
  0x8d   : > { %306 = vst [vmem:[#allocation2 + $0xe8] sm:$0xff] %v2177_v0  ;;  %307 = vst [vmem:[#allocation2 + $0xb8] sm:$0xff] %v2177_v0 }
  0x8e   : > { %308 = vst [vmem:[#allocation2 + $0x60] sm:$0xff] %v2177_v0  ;;  %309 = vst [vmem:[#allocation2 + $0xf0] sm:$0xff] %v2177_v0 }
  0x8f   : > { %310 = vst [vmem:[#allocation2 + $0x8] sm:$0xff] %v2177_v0  ;;  %311 = vst [vmem:[#allocation2 + $0x78] sm:$0xff] %v2177_v0 }
  0x90   : > { %312 = vst [vmem:[#allocation2 + $0x38] sm:$0xff] %v2177_v0  ;;  %313 = vst [vmem:[#allocation2 + $0x58] sm:$0xff] %v2177_v0 }
  0x91   : > { %314 = vst [vmem:[#allocation2 + $0x40] sm:$0xff] %v2177_v0  ;;  %315 = vst [vmem:[#allocation2 + $0xc8] sm:$0xff] %v2177_v0 }
  0x92   : > { %316 = vst [vmem:[#allocation2 + $0xe0] sm:$0xff] %v2177_v0  ;;  %317 = vst [vmem:[#allocation2 + $0x90] sm:$0xff] %v2177_v0 }
  0x93   : > { %318 = vst [vmem:[#allocation2 + $0x70] sm:$0xff] %v2177_v0  ;;  %319 = vst [vmem:[#allocation2 + $0xc0] sm:$0xff] %v2177_v0 }
  0x94   : > { %320 = vst [vmem:[#allocation2 + $0xa8] sm:$0xff] %v2177_v0  ;;  %321 = vst [vmem:[#allocation2 + $0xd0] sm:$0xff] %v2177_v0 }
  0x95   : > { %322 = vst [vmem:[#allocation2 + $0x10] sm:$0xff] %v2177_v0  ;;  %323 = vst [vmem:[#allocation2 + $0x28] sm:$0xff] %v2177_v0 }
  0x96   : > { %324 = vst [vmem:[#allocation2 + $0xa0] sm:$0xff] %v2177_v0  ;;  %325 = vst [vmem:[#allocation2 + $0xf8] sm:$0xff] %v2177_v0 }
  0x97   : > { %326 = vst [vmem:[#allocation2 + $0x20] sm:$0xff] %v2177_v0  ;;  %327 = vst [vmem:[#allocation2 + $0x98] sm:$0xff] %v2177_v0 }
  0x98 PF: > { %v1869_v1 = vld [vmem:[%s2412_s6 + $0x78] sm:$0xff]   ;;  %v1871_v3 = vld [vmem:[%s2412_s6 + $0x70] sm:$0xff]   ;;  %v1873_v5 = vld [vmem:[%s2412_s6 + $0x68] sm:$0xff]   ;;  %s2693_s8 = sld [smem:[#allocation16_spill]] }
  0x99   : > { %v1870_v2 = vld [vmem:[%s2412_s6 + $0x38] sm:$0xff]   ;;  %1431 = vmatprep.subr.bf16.mxu0 %v1869_v1  ;;  %1671 = vmatprep.subr.bf16.mxu1 %v1869_v1  ;;  %v1872_v4 = vld [vmem:[%s2412_s6 + $0x30] sm:$0xff]   ;;  %v1874_v6 = vld [vmem:[%s2412_s6 + $0x28] sm:$0xff]  }
  0x9a   : > { %1432 = vmatpush3.bf16.msra.mxu0 %v1870_v2  ;;  %1679 = vmatpush3.bf16.msra.mxu1 %v1870_v2  ;;  %v1875_v7 = vld [vmem:[%s2412_s6 + $0x60] sm:$0xff]   ;;  %v1877_v9 = vld [vmem:[%s2412_s6 + $0x58] sm:$0xff]   ;;  %v1879_v11 = vld [vmem:[%s2412_s6 + $0x50] sm:$0xff]  }
  0x9b   : > { %1433 = vmatprep.subr.bf16.mxu0 %v1871_v3  ;;  %1672 = vmatprep.subr.bf16.mxu1 %v1871_v3  ;;  %v1876_v8 = vld [vmem:[%s2412_s6 + $0x20] sm:$0xff]   ;;  %v1878_v10 = vld [vmem:[%s2412_s6 + $0x18] sm:$0xff]   ;;  %v1880_v14 = vld [vmem:[%s2412_s6 + $0x10] sm:$0xff]  }
  0x9c   : > { %v1887_v12 = vld [vmem:[%s2404_s5 + $0x4] ss:$8 sps:$4 sm:$0xff]   ;;  %v1885_v19 = vld [vmem:[%s2404_s5] ss:$8 sps:$4 sm:$0xff]   ;;  %v1891_v21 = vld [vmem:[%s2404_s5 + $0x14] ss:$8 sps:$4 sm:$0xff]  }
  0x9d   : > { %v1890_v13 = vld [vmem:[%s2404_s5 + $0x84] ss:$8 sps:$4 sm:$0xff]   ;;  %712 = vmatprep.mubr.bf16.mxu0 %v1887_v12  ;;  %v1888_v20 = vld [vmem:[%s2404_s5 + $0x80] ss:$8 sps:$4 sm:$0xff]   ;;  %v1893_v22 = vld [vmem:[%s2404_s5 + $0x94] ss:$8 sps:$4 sm:$0xff]  }
  0x9e   : > { %1434 = vmatpush3.bf16.msra.mxu0 %v1872_v4  ;;  %1680 = vmatpush3.bf16.msra.mxu1 %v1872_v4  ;;  %v1881_v15 = vld [vmem:[%s2412_s6 + $0x48] sm:$0xff]   ;;  %v1883_v17 = vld [vmem:[%s2412_s6 + $0x40] sm:$0xff]   ;;  %v1895_v23 = vld [vmem:[%s2404_s5 + $0x10] ss:$8 sps:$4 sm:$0xff]   ;;  %p1421_p11 = scmp.ne.s32.totalorder %s2693_s8, 1 }
  0x9f   : > { %1435 = vmatprep.subr.bf16.mxu0 %v1873_v5  ;;  %1673 = vmatprep.subr.bf16.mxu1 %v1873_v5  ;;  %v1882_v16 = vld [vmem:[%s2412_s6 + $0x8] sm:$0xff]   ;;  %v1884_v18 = vld [vmem:[%s2412_s6] sm:$0xff]   ;;  %v1896_v24 = vld [vmem:[%s2404_s5 + $0x90] ss:$8 sps:$4 sm:$0xff]   ;;  %s2694_s30 = sld [smem:[#allocation26_spill]] (!%p1421_p11) }
  0xa0   : > { %776 = vmatprep.mubr.bf16.mxu1 %v1890_v13  ;;  %v1897_v25 = vld [vmem:[%s2404_s5 + $0x24] ss:$8 sps:$4 sm:$0xff]   ;;  %v1901_v27 = vld [vmem:[%s2404_s5 + $0x20] ss:$8 sps:$4 sm:$0xff]   ;;  %v1903_v29 = vld [vmem:[%s2404_s5 + $0x34] ss:$8 sps:$4 sm:$0xff]  }
  0xa1   : > { %v1899_v26 = vld [vmem:[%s2404_s5 + $0xa4] ss:$8 sps:$4 sm:$0xff]   ;;  %v1902_v28 = vld [vmem:[%s2404_s5 + $0xa0] ss:$8 sps:$4 sm:$0xff]   ;;  %v1905_v30 = vld [vmem:[%s2404_s5 + $0xb4] ss:$8 sps:$4 sm:$0xff]  }
  0xa2   : > { %1436 = vmatpush3.bf16.msra.mxu0 %v1874_v6  ;;  %1681 = vmatpush3.bf16.msra.mxu1 %v1874_v6  ;;  %v1907_v31 = vld [vmem:[%s2404_s5 + $0x30] ss:$8 sps:$4 sm:$0xff]   ;;  %v1909_v33 = vld [vmem:[%s2404_s5 + $0x44] ss:$8 sps:$4 sm:$0xff]   ;;  %v1913_v35 = vld [vmem:[%s2404_s5 + $0x40] ss:$8 sps:$4 sm:$0xff]  }
  0xa3   : > { %1437 = vmatprep.subr.bf16.mxu0 %v1875_v7  ;;  %1674 = vmatprep.subr.bf16.mxu1 %v1875_v7  ;;  %v1908_v32 = vld [vmem:[%s2404_s5 + $0xb0] ss:$8 sps:$4 sm:$0xff]   ;;  %v1911_v34 = vld [vmem:[%s2404_s5 + $0xc4] ss:$8 sps:$4 sm:$0xff]   ;;  %v1914_v36 = vld [vmem:[%s2404_s5 + $0xc0] ss:$8 sps:$4 sm:$0xff]  }
  0xa4   : > { %v1915_v37 = vld [vmem:[%s2404_s5 + $0x54] ss:$8 sps:$4 sm:$0xff]   ;;  %v1919_v39 = vld [vmem:[%s2404_s5 + $0x50] ss:$8 sps:$4 sm:$0xff]   ;;  %v1921_v41 = vld [vmem:[%s2404_s5 + $0x64] ss:$8 sps:$4 sm:$0xff]  }
  0xa5   : > { %v1917_v38 = vld [vmem:[%s2404_s5 + $0xd4] ss:$8 sps:$4 sm:$0xff]   ;;  %v1920_v40 = vld [vmem:[%s2404_s5 + $0xd0] ss:$8 sps:$4 sm:$0xff]   ;;  %v1923_v42 = vld [vmem:[%s2404_s5 + $0xe4] ss:$8 sps:$4 sm:$0xff]  }
  0xa6   : > { %1438 = vmatpush3.bf16.msra.mxu0 %v1876_v8  ;;  %1682 = vmatpush3.bf16.msra.mxu1 %v1876_v8  ;;  %v1925_v43 = vld [vmem:[%s2404_s5 + $0x60] ss:$8 sps:$4 sm:$0xff]   ;;  %v1927_v45 = vld [vmem:[%s2404_s5 + $0x74] ss:$8 sps:$4 sm:$0xff]   ;;  %v1931_v47 = vld [vmem:[%s2404_s5 + $0x70] ss:$8 sps:$4 sm:$0xff]  }
  0xa7   : > { %1439 = vmatprep.subr.bf16.mxu0 %v1877_v9  ;;  %1675 = vmatprep.subr.bf16.mxu1 %v1877_v9  ;;  %v1926_v44 = vld [vmem:[%s2404_s5 + $0xe0] ss:$8 sps:$4 sm:$0xff]   ;;  %v1929_v46 = vld [vmem:[%s2404_s5 + $0xf4] ss:$8 sps:$4 sm:$0xff]   ;;  %v1932_v48 = vld [vmem:[%s2404_s5 + $0xf0] ss:$8 sps:$4 sm:$0xff]  }
  0xa8   : > { %v328_v51 = vld [vmem:[#allocation2 + $0xb0] sm:$0xff]  ;;  %v344_v53 = vld [vmem:[#allocation2 + $0x38] sm:$0xff]  ;;  %v329_v61 = vld [vmem:[#allocation2] sm:$0xff] }
  0xa9   : > { %v345_v63 = vld [vmem:[#allocation2 + $0x58] sm:$0xff]  ;;  %v346_v9 = vld [vmem:[#allocation2 + $0x40] sm:$0xff] }
  0xaa   : > { %1440 = vmatpush3.bf16.msra.mxu0 %v1878_v10  ;;  %1683 = vmatpush3.bf16.msra.mxu1 %v1878_v10  ;;  %v330_v7 = vld [vmem:[#allocation2 + $0xd8] sm:$0xff] }
  0xab   : > { %1441 = vmatprep.subr.bf16.mxu0 %v1879_v11  ;;  %1676 = vmatprep.subr.bf16.mxu1 %v1879_v11 }
  0xae   : > { %1442 = vmatpush3.bf16.msra.mxu0 %v1880_v14  ;;  %1684 = vmatpush3.bf16.msra.mxu1 %v1880_v14 }
  0xaf   : > { %1443 = vmatprep.subr.bf16.mxu0 %v1881_v15  ;;  %1677 = vmatprep.subr.bf16.mxu1 %v1881_v15 }
  0xb2   : > { %1444 = vmatpush3.bf16.msra.mxu0 %v1882_v16  ;;  %1685 = vmatpush3.bf16.msra.mxu1 %v1882_v16 }
  0xb3   : > { %1445 = vmatprep.subr.bf16.mxu0 %v1883_v17  ;;  %1678 = vmatprep.subr.bf16.mxu1 %v1883_v17  ;;  %v331_v17 = vld [vmem:[#allocation2 + $0x18] sm:$0xff] }
  0xb6   : > { %1446 = vmatpush3.bf16.msra.mxu0 %v1884_v18  ;;  %1686 = vmatpush3.bf16.msra.mxu1 %v1884_v18 }
  0xb9   : > { %713 = vmatmul.mubr.bf16.vlgmr.msra.gmra.mxu0 %v1885_v19  ;;  %777 = vmatmul.mubr.bf16.vlgmr.msra.gmra.mxu1 %v1888_v20  ;;  %v347_v19 = vld [vmem:[#allocation2 + $0xc8] sm:$0xff] }
  0xba   : > { %720 = vmatprep.mubr.bf16.mxu0 %v1891_v21  ;;  %784 = vmatprep.mubr.bf16.mxu1 %v1893_v22 }
  0xc1   : > { %721 = vmatmul.mubr.bf16.gmra.mxu0 %v1895_v23  ;;  %785 = vmatmul.mubr.bf16.gmra.mxu1 %v1896_v24 }
  0xc2   : > { %728 = vmatprep.mubr.bf16.mxu0 %v1897_v25  ;;  %792 = vmatprep.mubr.bf16.mxu1 %v1899_v26 }
  0xc9   : > { %729 = vmatmul.mubr.bf16.gmra.mxu0 %v1901_v27  ;;  %793 = vmatmul.mubr.bf16.gmra.mxu1 %v1902_v28  ;;  %v332_v27 = vld [vmem:[#allocation2 + $0x50] sm:$0xff] }
  0xca   : > { %736 = vmatprep.mubr.bf16.mxu0 %v1903_v29  ;;  %800 = vmatprep.mubr.bf16.mxu1 %v1905_v30  ;;  %v348_v29 = vld [vmem:[#allocation2 + $0xe0] sm:$0xff] }
  0xd1   : > { %737 = vmatmul.mubr.bf16.gmra.mxu0 %v1907_v31  ;;  %801 = vmatmul.mubr.bf16.gmra.mxu1 %v1908_v32 }
  0xd2   : > { %744 = vmatprep.mubr.bf16.mxu0 %v1909_v33  ;;  %808 = vmatprep.mubr.bf16.mxu1 %v1911_v34 }
  0xd9   : > { %745 = vmatmul.mubr.bf16.gmra.mxu0 %v1913_v35  ;;  %809 = vmatmul.mubr.bf16.gmra.mxu1 %v1914_v36 }
  0xda   : > { %752 = vmatprep.mubr.bf16.mxu0 %v1915_v37  ;;  %816 = vmatprep.mubr.bf16.mxu1 %v1917_v38  ;;  %v333_v37 = vld [vmem:[#allocation2 + $0x68] sm:$0xff] }
  0xe1   : > { %753 = vmatmul.mubr.bf16.gmra.mxu0 %v1919_v39  ;;  %817 = vmatmul.mubr.bf16.gmra.mxu1 %v1920_v40  ;;  %v349_v39 = vld [vmem:[#allocation2 + $0x90] sm:$0xff] }
  0xe2   : > { %760 = vmatprep.mubr.bf16.mxu0 %v1921_v41  ;;  %824 = vmatprep.mubr.bf16.mxu1 %v1923_v42 }
  0xe9   : > { %761 = vmatmul.mubr.bf16.gmra.mxu0 %v1925_v43  ;;  %825 = vmatmul.mubr.bf16.gmra.mxu1 %v1926_v44 }
  0xea   : > { %768 = vmatprep.mubr.bf16.mxu0 %v1927_v45  ;;  %832 = vmatprep.mubr.bf16.mxu1 %v1929_v46 }
  0xf1   : > { %769 = vmatmul.mubr.bf16.gmra.mxu0 %v1931_v47  ;;  %833 = vmatmul.mubr.bf16.gmra.mxu1 %v1932_v48  ;;  %v334_v47 = vld [vmem:[#allocation2 + $0x30] sm:$0xff] }
 0x179   : > { %v1447_v49 = vpop.f32.mrf.mxu0  ;;  %v1495_v50 = vpop.f32.mrf.mxu1 }
 0x17b   : > { %v1448_v52 = vpop.f32.mrf.mxu0  ;;  %v1496_v54 = vpop.f32.mrf.mxu1 }
 0x17c   : > { %v1449_v55 = vadd.f32 %v1448_v52, %v1447_v49  ;;  %v1497_v56 = vadd.f32 %v1496_v54, %v1495_v50  ;;  %v350_v49 = vld [vmem:[#allocation2 + $0x70] sm:$0xff] }
 0x17d   : > { %v1450_v57 = vpop.f32.mrf.mxu0  ;;  %v1498_v58 = vpop.f32.mrf.mxu1 }
 0x17e   : > { %v841_v59 = vadd.f32 %v1449_v55, %v328_v51  ;;  %v857_v60 = vadd.f32 %v1497_v56, %v344_v53 }
 0x17f   : > { %v1451_v62 = vpop.f32.mrf.mxu0  ;;  %v1499_v0 = vpop.f32.mrf.mxu1 }
 0x180   : > { %873 = vst [vmem:[#allocation2 + $0xb0] sm:$0xff] %v841_v59  ;;  %889 = vst [vmem:[#allocation2 + $0x38] sm:$0xff] %v857_v60  ;;  %v1452_v1 = vadd.f32 %v1451_v62, %v1450_v57  ;;  %v1500_v2 = vadd.f32 %v1499_v0, %v1498_v58  ;;  %v335_v57 = vld [vmem:[#allocation2 + $0x48] sm:$0xff]  ;;  %v351_v59 = vld [vmem:[#allocation2 + $0xc0] sm:$0xff] }
 0x181   : > { %v1453_v3 = vpop.f32.mrf.mxu0  ;;  %v1501_v4 = vpop.f32.mrf.mxu1 }
 0x182   : > { %v842_v5 = vadd.f32 %v1452_v1, %v329_v61  ;;  %v858_v6 = vadd.f32 %v1500_v2, %v345_v63 }
 0x183   : > { %v1454_v8 = vpop.f32.mrf.mxu0  ;;  %v1502_v10 = vpop.f32.mrf.mxu1 }
 0x184   : > { %874 = vst [vmem:[#allocation2] sm:$0xff] %v842_v5  ;;  %890 = vst [vmem:[#allocation2 + $0x58] sm:$0xff] %v858_v6  ;;  %v1455_v11 = vadd.f32 %v1454_v8, %v1453_v3  ;;  %v1503_v12 = vadd.f32 %v1502_v10, %v1501_v4  ;;  %v336_v3 = vld [vmem:[#allocation2 + $0x80] sm:$0xff]  ;;  %v352_v5 = vld [vmem:[#allocation2 + $0xa8] sm:$0xff] }
 0x185   : > { %v1456_v13 = vpop.f32.mrf.mxu0  ;;  %v1504_v14 = vpop.f32.mrf.mxu1 }
 0x186   : > { %v843_v15 = vadd.f32 %v1455_v11, %v330_v7  ;;  %v859_v16 = vadd.f32 %v1503_v12, %v346_v9 }
 0x187   : > { %v1457_v18 = vpop.f32.mrf.mxu0  ;;  %v1505_v20 = vpop.f32.mrf.mxu1 }
 0x188   : > { %875 = vst [vmem:[#allocation2 + $0xd8] sm:$0xff] %v843_v15  ;;  %891 = vst [vmem:[#allocation2 + $0x40] sm:$0xff] %v859_v16  ;;  %v1458_v21 = vadd.f32 %v1457_v18, %v1456_v13  ;;  %v1506_v22 = vadd.f32 %v1505_v20, %v1504_v14  ;;  %v337_v13 = vld [vmem:[#allocation2 + $0x88] sm:$0xff]  ;;  %v353_v15 = vld [vmem:[#allocation2 + $0xd0] sm:$0xff] }
 0x189   : > { %v1459_v23 = vpop.f32.mrf.mxu0  ;;  %v1507_v24 = vpop.f32.mrf.mxu1 }
 0x18a   : > { %v844_v25 = vadd.f32 %v1458_v21, %v331_v17  ;;  %v860_v26 = vadd.f32 %v1506_v22, %v347_v19 }
 0x18b   : > { %v1460_v28 = vpop.f32.mrf.mxu0  ;;  %v1508_v30 = vpop.f32.mrf.mxu1 }
 0x18c   : > { %876 = vst [vmem:[#allocation2 + $0x18] sm:$0xff] %v844_v25  ;;  %892 = vst [vmem:[#allocation2 + $0xc8] sm:$0xff] %v860_v26  ;;  %v1461_v31 = vadd.f32 %v1460_v28, %v1459_v23  ;;  %v1509_v32 = vadd.f32 %v1508_v30, %v1507_v24  ;;  %v338_v23 = vld [vmem:[#allocation2 + $0xe8] sm:$0xff]  ;;  %v354_v25 = vld [vmem:[#allocation2 + $0x10] sm:$0xff] }
 0x18d   : > { %v1462_v33 = vpop.f32.mrf.mxu0  ;;  %v1510_v34 = vpop.f32.mrf.mxu1 }
 0x18e   : > { %v845_v35 = vadd.f32 %v1461_v31, %v332_v27  ;;  %v861_v36 = vadd.f32 %v1509_v32, %v348_v29 }
 0x18f   : > { %v1463_v38 = vpop.f32.mrf.mxu0  ;;  %v1511_v40 = vpop.f32.mrf.mxu1 }
 0x190   : > { %877 = vst [vmem:[#allocation2 + $0x50] sm:$0xff] %v845_v35  ;;  %893 = vst [vmem:[#allocation2 + $0xe0] sm:$0xff] %v861_v36  ;;  %v1464_v41 = vadd.f32 %v1463_v38, %v1462_v33  ;;  %v1512_v42 = vadd.f32 %v1511_v40, %v1510_v34  ;;  %v339_v33 = vld [vmem:[#allocation2 + $0xb8] sm:$0xff]  ;;  %v355_v35 = vld [vmem:[#allocation2 + $0x28] sm:$0xff] }
 0x191   : > { %v1465_v43 = vpop.f32.mrf.mxu0  ;;  %v1513_v44 = vpop.f32.mrf.mxu1 }
 0x192   : > { %v846_v45 = vadd.f32 %v1464_v41, %v333_v37  ;;  %v862_v46 = vadd.f32 %v1512_v42, %v349_v39 }
 0x193   : > { %v1466_v48 = vpop.f32.mrf.mxu0  ;;  %v1514_v50 = vpop.f32.mrf.mxu1 }
 0x194   : > { %878 = vst [vmem:[#allocation2 + $0x68] sm:$0xff] %v846_v45  ;;  %894 = vst [vmem:[#allocation2 + $0x90] sm:$0xff] %v862_v46  ;;  %v1467_v51 = vadd.f32 %v1466_v48, %v1465_v43  ;;  %v1515_v52 = vadd.f32 %v1514_v50, %v1513_v44  ;;  %v340_v43 = vld [vmem:[#allocation2 + $0x60] sm:$0xff] }
 0x195   : > { %v1468_v53 = vpop.f32.mrf.mxu0  ;;  %v1516_v54 = vpop.f32.mrf.mxu1  ;;  %v356_v45 = vld [vmem:[#allocation2 + $0xa0] sm:$0xff] }
 0x196   : > { %v847_v55 = vadd.f32 %v1467_v51, %v334_v47  ;;  %v863_v56 = vadd.f32 %v1515_v52, %v350_v49 }
 0x197   : > { %v1469_v58 = vpop.f32.mrf.mxu0  ;;  %v1517_v60 = vpop.f32.mrf.mxu1 }
 0x198   : > { %879 = vst [vmem:[#allocation2 + $0x30] sm:$0xff] %v847_v55  ;;  %895 = vst [vmem:[#allocation2 + $0x70] sm:$0xff] %v863_v56  ;;  %v1470_v61 = vadd.f32 %v1469_v58, %v1468_v53  ;;  %v1518_v62 = vadd.f32 %v1517_v60, %v1516_v54  ;;  %v341_v53 = vld [vmem:[#allocation2 + $0xf0] sm:$0xff]  ;;  %v357_v55 = vld [vmem:[#allocation2 + $0xf8] sm:$0xff] }
 0x199   : > { %v1471_v63 = vpop.f32.mrf.mxu0  ;;  %v1519_v0 = vpop.f32.mrf.mxu1 }
 0x19a   : > { %v848_v1 = vadd.f32 %v1470_v61, %v335_v57  ;;  %v864_v2 = vadd.f32 %v1518_v62, %v351_v59 }
 0x19b   : > { %v1472_v4 = vpop.f32.mrf.mxu0  ;;  %v1520_v6 = vpop.f32.mrf.mxu1 }
 0x19c   : > { %880 = vst [vmem:[#allocation2 + $0x48] sm:$0xff] %v848_v1  ;;  %896 = vst [vmem:[#allocation2 + $0xc0] sm:$0xff] %v864_v2  ;;  %v1473_v7 = vadd.f32 %v1472_v4, %v1471_v63  ;;  %v1521_v8 = vadd.f32 %v1520_v6, %v1519_v0  ;;  %v342_v63 = vld [vmem:[#allocation2 + $0x8] sm:$0xff]  ;;  %v358_v1 = vld [vmem:[#allocation2 + $0x20] sm:$0xff] }
 0x19d   : > { %v1474_v9 = vpop.f32.mrf.mxu0  ;;  %v1522_v10 = vpop.f32.mrf.mxu1 }
 0x19e   : > { %v849_v11 = vadd.f32 %v1473_v7, %v336_v3  ;;  %v865_v12 = vadd.f32 %v1521_v8, %v352_v5 }
 0x19f   : > { %v1475_v14 = vpop.f32.mrf.mxu0  ;;  %v1523_v16 = vpop.f32.mrf.mxu1 }
 0x1a0   : > { %881 = vst [vmem:[#allocation2 + $0x80] sm:$0xff] %v849_v11  ;;  %897 = vst [vmem:[#allocation2 + $0xa8] sm:$0xff] %v865_v12  ;;  %v1476_v17 = vadd.f32 %v1475_v14, %v1474_v9  ;;  %v1524_v18 = vadd.f32 %v1523_v16, %v1522_v10  ;;  %v343_v9 = vld [vmem:[#allocation2 + $0x78] sm:$0xff] }
 0x1a1   : > { %v1477_v19 = vpop.f32.mrf.mxu0  ;;  %v1525_v20 = vpop.f32.mrf.mxu1  ;;  %v359_v11 = vld [vmem:[#allocation2 + $0x98] sm:$0xff] }
 0x1a2   : > { %v850_v21 = vadd.f32 %v1476_v17, %v337_v13  ;;  %v866_v22 = vadd.f32 %v1524_v18, %v353_v15 }
 0x1a3   : > { %v1478_v24 = vpop.f32.mrf.mxu0  ;;  %v1526_v26 = vpop.f32.mrf.mxu1 }
 0x1a4   : > { %882 = vst [vmem:[#allocation2 + $0x88] sm:$0xff] %v850_v21  ;;  %898 = vst [vmem:[#allocation2 + $0xd0] sm:$0xff] %v866_v22  ;;  %v1479_v27 = vadd.f32 %v1478_v24, %v1477_v19  ;;  %v1527_v28 = vadd.f32 %v1526_v26, %v1525_v20 }
 0x1a5   : > { %v1480_v29 = vpop.f32.mrf.mxu0  ;;  %v1528_v30 = vpop.f32.mrf.mxu1 }
 0x1a6   : > { %v851_v31 = vadd.f32 %v1479_v27, %v338_v23  ;;  %v867_v32 = vadd.f32 %v1527_v28, %v354_v25 }
 0x1a7   : > { %v1481_v34 = vpop.f32.mrf.mxu0  ;;  %v1529_v36 = vpop.f32.mrf.mxu1 }
 0x1a8   : > { %883 = vst [vmem:[#allocation2 + $0xe8] sm:$0xff] %v851_v31  ;;  %899 = vst [vmem:[#allocation2 + $0x10] sm:$0xff] %v867_v32  ;;  %v1482_v37 = vadd.f32 %v1481_v34, %v1480_v29  ;;  %v1530_v38 = vadd.f32 %v1529_v36, %v1528_v30 }
 0x1a9   : > { %v1483_v39 = vpop.f32.mrf.mxu0  ;;  %v1531_v40 = vpop.f32.mrf.mxu1 }
 0x1aa   : > { %v852_v41 = vadd.f32 %v1482_v37, %v339_v33  ;;  %v868_v42 = vadd.f32 %v1530_v38, %v355_v35 }
 0x1ab   : > { %v1484_v44 = vpop.f32.mrf.mxu0  ;;  %v1532_v46 = vpop.f32.mrf.mxu1 }
 0x1ac   : > { %884 = vst [vmem:[#allocation2 + $0xb8] sm:$0xff] %v852_v41  ;;  %900 = vst [vmem:[#allocation2 + $0x28] sm:$0xff] %v868_v42  ;;  %v1485_v47 = vadd.f32 %v1484_v44, %v1483_v39  ;;  %v1533_v48 = vadd.f32 %v1532_v46, %v1531_v40 }
 0x1ad   : > { %v1486_v49 = vpop.f32.mrf.mxu0  ;;  %v1534_v50 = vpop.f32.mrf.mxu1 }
 0x1ae   : > { %v853_v51 = vadd.f32 %v1485_v47, %v340_v43  ;;  %v869_v52 = vadd.f32 %v1533_v48, %v356_v45 }
 0x1af   : > { %v1487_v54 = vpop.f32.mrf.mxu0  ;;  %v1535_v56 = vpop.f32.mrf.mxu1 }
 0x1b0   : > { %885 = vst [vmem:[#allocation2 + $0x60] sm:$0xff] %v853_v51  ;;  %901 = vst [vmem:[#allocation2 + $0xa0] sm:$0xff] %v869_v52  ;;  %v1488_v57 = vadd.f32 %v1487_v54, %v1486_v49  ;;  %v1536_v58 = vadd.f32 %v1535_v56, %v1534_v50 }
 0x1b1   : > { %v1489_v59 = vpop.f32.mrf.mxu0  ;;  %v1537_v60 = vpop.f32.mrf.mxu1 }
 0x1b2   : > { %v854_v61 = vadd.f32 %v1488_v57, %v341_v53  ;;  %v870_v62 = vadd.f32 %v1536_v58, %v357_v55 }
 0x1b3   : > { %v1490_v0 = vpop.f32.mrf.mxu0  ;;  %v1538_v2 = vpop.f32.mrf.mxu1 }
 0x1b4   : > { %886 = vst [vmem:[#allocation2 + $0xf0] sm:$0xff] %v854_v61  ;;  %902 = vst [vmem:[#allocation2 + $0xf8] sm:$0xff] %v870_v62  ;;  %v1491_v3 = vadd.f32 %v1490_v0, %v1489_v59  ;;  %v1539_v4 = vadd.f32 %v1538_v2, %v1537_v60 }
 0x1b5   : > { %v1492_v5 = vpop.f32.mrf.mxu0  ;;  %v1540_v6 = vpop.f32.mrf.mxu1 }
 0x1b6   : > { %v855_v7 = vadd.f32 %v1491_v3, %v342_v63  ;;  %v871_v8 = vadd.f32 %v1539_v4, %v358_v1 }
 0x1b7   : > { %v1493_v10 = vpop.f32.mrf.mxu0  ;;  %v1541_v12 = vpop.f32.mrf.mxu1 }
 0x1b8   : > { %887 = vst [vmem:[#allocation2 + $0x8] sm:$0xff] %v855_v7  ;;  %903 = vst [vmem:[#allocation2 + $0x20] sm:$0xff] %v871_v8  ;;  %v1494_v13 = vadd.f32 %v1493_v10, %v1492_v5  ;;  %v1542_v14 = vadd.f32 %v1541_v12, %v1540_v6  ;;  %908 = sbr.rel (%p1421_p11) target bundleno = 705 (0x2c1), region = 56 }
 0x1ba   : > { %v856_v15 = vadd.f32 %v1494_v13, %v343_v9  ;;  %v872_v16 = vadd.f32 %v1542_v14, %v359_v11 }
 0x1bc   : > { %888 = vst [vmem:[#allocation2 + $0x78] sm:$0xff] %v856_v15  ;;  %904 = vst [vmem:[#allocation2 + $0x98] sm:$0xff] %v872_v16 }
 0x1bd   : > { %v956_v17 = vld [vmem:[#allocation8 + $0x78] sm:$0xff]  ;;  %v955_v18 = vld [vmem:[#allocation8 + $0x70] sm:$0xff]  ;;  %v954_v19 = vld [vmem:[#allocation8 + $0x68] sm:$0xff] }
 0x1be   : > { %1591 = vmatprep.subr.mxu0 %v956_v17  ;;  %1687 = vmatprep.subr.mxu1 %v956_v17  ;;  %v953_v20 = vld [vmem:[#allocation8 + $0x60] sm:$0xff]  ;;  %v952_v21 = vld [vmem:[#allocation8 + $0x58] sm:$0xff]  ;;  %v951_v22 = vld [vmem:[#allocation8 + $0x50] sm:$0xff] }
 0x1bf   : > { %1592 = vmatpush3.msra.mxu0 %v956_v17  ;;  %1703 = vmatpush3.msra.mxu1 %v956_v17  ;;  %v950_v23 = vld [vmem:[#allocation8 + $0x48] sm:$0xff]  ;;  %v949_v24 = vld [vmem:[#allocation8 + $0x40] sm:$0xff]  ;;  %v948_v25 = vld [vmem:[#allocation8 + $0x38] sm:$0xff] }
 0x1c0   : > { %1593 = vmatprep.subr.mxu0 %v955_v18  ;;  %1688 = vmatprep.subr.mxu1 %v955_v18  ;;  %v947_v26 = vld [vmem:[#allocation8 + $0x30] sm:$0xff]  ;;  %v946_v27 = vld [vmem:[#allocation8 + $0x28] sm:$0xff]  ;;  %v945_v28 = vld [vmem:[#allocation8 + $0x20] sm:$0xff] }
 0x1c1   : > { %1594 = vmatpush3.msra.mxu0 %v955_v18  ;;  %1704 = vmatpush3.msra.mxu1 %v955_v18  ;;  %v944_v29 = vld [vmem:[#allocation8 + $0x18] sm:$0xff]  ;;  %v943_v30 = vld [vmem:[#allocation8 + $0x10] sm:$0xff]  ;;  %v942_v31 = vld [vmem:[#allocation8 + $0x8] sm:$0xff] }
 0x1c2   : > { %1595 = vmatprep.subr.mxu0 %v954_v19  ;;  %1689 = vmatprep.subr.mxu1 %v954_v19  ;;  %v941_v32 = vld [vmem:[#allocation8] sm:$0xff]  ;;  %v909_v33 = vld [vmem:[#allocation2 + $0xb0] sm:$0xff]  ;;  %v925_v34 = vld [vmem:[#allocation2 + $0x38] sm:$0xff] }
 0x1c3   : > { %1596 = vmatpush3.msra.mxu0 %v954_v19  ;;  %1705 = vmatpush3.msra.mxu1 %v954_v19  ;;  %v910_v35 = vld [vmem:[#allocation2] sm:$0xff]  ;;  %v926_v36 = vld [vmem:[#allocation2 + $0x58] sm:$0xff]  ;;  %v928_v40 = vld [vmem:[#allocation2 + $0xc8] sm:$0xff] }
 0x1c4   : > { %1597 = vmatprep.subr.mxu0 %v953_v20  ;;  %1690 = vmatprep.subr.mxu1 %v953_v20  ;;  %v911_v37 = vld [vmem:[#allocation2 + $0xd8] sm:$0xff]  ;;  %v927_v38 = vld [vmem:[#allocation2 + $0x40] sm:$0xff]  ;;  %v913_v41 = vld [vmem:[#allocation2 + $0x50] sm:$0xff] }
 0x1c5   : > { %1598 = vmatpush3.msra.mxu0 %v953_v20  ;;  %1706 = vmatpush3.msra.mxu1 %v953_v20  ;;  %v912_v39 = vld [vmem:[#allocation2 + $0x18] sm:$0xff]  ;;  %v929_v42 = vld [vmem:[#allocation2 + $0xe0] sm:$0xff]  ;;  %v914_v43 = vld [vmem:[#allocation2 + $0x68] sm:$0xff] }
 0x1c6   : > { %1599 = vmatprep.subr.mxu0 %v952_v21  ;;  %1691 = vmatprep.subr.mxu1 %v952_v21  ;;  %v930_v44 = vld [vmem:[#allocation2 + $0x90] sm:$0xff]  ;;  %v916_v47 = vld [vmem:[#allocation2 + $0x48] sm:$0xff]  ;;  %v932_v48 = vld [vmem:[#allocation2 + $0xc0] sm:$0xff] }
 0x1c7   : > { %1600 = vmatpush3.msra.mxu0 %v952_v21  ;;  %1707 = vmatpush3.msra.mxu1 %v952_v21  ;;  %v915_v45 = vld [vmem:[#allocation2 + $0x30] sm:$0xff]  ;;  %v917_v49 = vld [vmem:[#allocation2 + $0x80] sm:$0xff]  ;;  %v933_v50 = vld [vmem:[#allocation2 + $0xa8] sm:$0xff] }
 0x1c8   : > { %1601 = vmatprep.subr.mxu0 %v951_v22  ;;  %1692 = vmatprep.subr.mxu1 %v951_v22  ;;  %v931_v46 = vld [vmem:[#allocation2 + $0x70] sm:$0xff]  ;;  %v918_v51 = vld [vmem:[#allocation2 + $0x88] sm:$0xff]  ;;  %v920_v55 = vld [vmem:[#allocation2 + $0xb8] sm:$0xff] }
 0x1c9   : > { %1602 = vmatpush3.msra.mxu0 %v951_v22  ;;  %1708 = vmatpush3.msra.mxu1 %v951_v22  ;;  %v934_v52 = vld [vmem:[#allocation2 + $0xd0] sm:$0xff]  ;;  %v919_v53 = vld [vmem:[#allocation2 + $0xe8] sm:$0xff]  ;;  %v921_v57 = vld [vmem:[#allocation2 + $0x60] sm:$0xff] }
 0x1ca   : > { %1603 = vmatprep.subr.mxu0 %v950_v23  ;;  %1693 = vmatprep.subr.mxu1 %v950_v23  ;;  %v935_v54 = vld [vmem:[#allocation2 + $0x10] sm:$0xff]  ;;  %v936_v56 = vld [vmem:[#allocation2 + $0x28] sm:$0xff]  ;;  %v937_v58 = vld [vmem:[#allocation2 + $0xa0] sm:$0xff] }
 0x1cb   : > { %1604 = vmatpush3.msra.mxu0 %v950_v23  ;;  %1709 = vmatpush3.msra.mxu1 %v950_v23  ;;  %v922_v59 = vld [vmem:[#allocation2 + $0xf0] sm:$0xff]  ;;  %v938_v60 = vld [vmem:[#allocation2 + $0xf8] sm:$0xff]  ;;  %v923_v61 = vld [vmem:[#allocation2 + $0x8] sm:$0xff] }
 0x1cc   : > { %1605 = vmatprep.subr.mxu0 %v949_v24  ;;  %1694 = vmatprep.subr.mxu1 %v949_v24  ;;  %v939_v62 = vld [vmem:[#allocation2 + $0x20] sm:$0xff]  ;;  %v924_v63 = vld [vmem:[#allocation2 + $0x78] sm:$0xff] }
 0x1cd   : > { %1606 = vmatpush3.msra.mxu0 %v949_v24  ;;  %1710 = vmatpush3.msra.mxu1 %v949_v24  ;;  %v940_v0 = vld [vmem:[#allocation2 + $0x98] sm:$0xff]  ;;  %v2480_v1 = vld [vmem:[%s2694_s30] ss:$0 sm:$0xff] }
 0x1ce   : > { %1607 = vmatprep.subr.mxu0 %v948_v25  ;;  %1695 = vmatprep.subr.mxu1 %v948_v25 }
 0x1cf   : > { %1608 = vmatpush3.msra.mxu0 %v948_v25  ;;  %1711 = vmatpush3.msra.mxu1 %v948_v25 }
 0x1d0   : > { %1609 = vmatprep.subr.mxu0 %v947_v26  ;;  %1696 = vmatprep.subr.mxu1 %v947_v26 }
 0x1d1   : > { %1610 = vmatpush3.msra.mxu0 %v947_v26  ;;  %1712 = vmatpush3.msra.mxu1 %v947_v26 }
 0x1d2   : > { %1611 = vmatprep.subr.mxu0 %v946_v27  ;;  %1697 = vmatprep.subr.mxu1 %v946_v27 }
 0x1d3   : > { %1612 = vmatpush3.msra.mxu0 %v946_v27  ;;  %1713 = vmatpush3.msra.mxu1 %v946_v27 }
 0x1d4   : > { %1613 = vmatprep.subr.mxu0 %v945_v28  ;;  %1698 = vmatprep.subr.mxu1 %v945_v28 }
 0x1d5   : > { %1614 = vmatpush3.msra.mxu0 %v945_v28  ;;  %1714 = vmatpush3.msra.mxu1 %v945_v28 }
 0x1d6   : > { %1615 = vmatprep.subr.mxu0 %v944_v29  ;;  %1699 = vmatprep.subr.mxu1 %v944_v29 }
 0x1d7   : > { %1616 = vmatpush3.msra.mxu0 %v944_v29  ;;  %1715 = vmatpush3.msra.mxu1 %v944_v29 }
 0x1d8   : > { %1617 = vmatprep.subr.mxu0 %v943_v30  ;;  %1700 = vmatprep.subr.mxu1 %v943_v30 }
 0x1d9   : > { %1618 = vmatpush3.msra.mxu0 %v943_v30  ;;  %1716 = vmatpush3.msra.mxu1 %v943_v30 }
 0x1da   : > { %1619 = vmatprep.subr.mxu0 %v942_v31  ;;  %1701 = vmatprep.subr.mxu1 %v942_v31 }
 0x1db   : > { %1620 = vmatpush3.msra.mxu0 %v942_v31  ;;  %1717 = vmatpush3.msra.mxu1 %v942_v31 }
 0x1dc   : > { %1621 = vmatprep.subr.mxu0 %v941_v32  ;;  %1702 = vmatprep.subr.mxu1 %v941_v32 }
 0x1dd   : > { %1622 = vmatpush3.msra.mxu0 %v941_v32  ;;  %1718 = vmatpush3.msra.mxu1 %v941_v32 }
 0x1de   : > { %1623 = vmatprep.mubr.f32.mxu0 %v909_v33  ;;  %1647 = vmatprep.mubr.f32.mxu1 %v925_v34 }
 0x1df   : > { %1624 = vmatmul.mubr.f32.vlgmr.msra.gmra.mxu0 %v910_v35  ;;  %1648 = vmatmul.mubr.f32.vlgmr.msra.gmra.mxu1 %v926_v36 }
 0x1e0   : > { %1626 = vmatprep.mubr.f32.mxu0 %v911_v37  ;;  %1650 = vmatprep.mubr.f32.mxu1 %v927_v38 }
 0x1e3   : > { %1627 = vmatmul.mubr.f32.gmra.mxu0 %v912_v39  ;;  %1651 = vmatmul.mubr.f32.gmra.mxu1 %v928_v40 }
 0x1e4   : > { %1629 = vmatprep.mubr.f32.mxu0 %v913_v41  ;;  %1653 = vmatprep.mubr.f32.mxu1 %v929_v42 }
 0x1e7   : > { %1630 = vmatmul.mubr.f32.gmra.mxu0 %v914_v43  ;;  %1654 = vmatmul.mubr.f32.gmra.mxu1 %v930_v44 }
 0x1e8   : > { %1632 = vmatprep.mubr.f32.mxu0 %v915_v45  ;;  %1656 = vmatprep.mubr.f32.mxu1 %v931_v46 }
 0x1eb   : > { %1633 = vmatmul.mubr.f32.gmra.mxu0 %v916_v47  ;;  %1657 = vmatmul.mubr.f32.gmra.mxu1 %v932_v48 }
 0x1ec   : > { %1635 = vmatprep.mubr.f32.mxu0 %v917_v49  ;;  %1659 = vmatprep.mubr.f32.mxu1 %v933_v50 }
 0x1ef   : > { %1636 = vmatmul.mubr.f32.gmra.mxu0 %v918_v51  ;;  %1660 = vmatmul.mubr.f32.gmra.mxu1 %v934_v52 }
 0x1f0   : > { %1638 = vmatprep.mubr.f32.mxu0 %v919_v53  ;;  %1662 = vmatprep.mubr.f32.mxu1 %v935_v54 }
 0x1f3   : > { %1639 = vmatmul.mubr.f32.gmra.mxu0 %v920_v55  ;;  %1663 = vmatmul.mubr.f32.gmra.mxu1 %v936_v56 }
 0x1f4   : > { %1641 = vmatprep.mubr.f32.mxu0 %v921_v57  ;;  %1665 = vmatprep.mubr.f32.mxu1 %v937_v58 }
 0x1f7   : > { %1642 = vmatmul.mubr.f32.gmra.mxu0 %v922_v59  ;;  %1666 = vmatmul.mubr.f32.gmra.mxu1 %v938_v60 }
 0x1f8   : > { %1644 = vmatprep.mubr.f32.mxu0 %v923_v61  ;;  %1668 = vmatprep.mubr.f32.mxu1 %v939_v62 }
 0x1fb   : > { %1645 = vmatmul.mubr.f32.gmra.mxu0 %v924_v63  ;;  %1669 = vmatmul.mubr.f32.gmra.mxu1 %v940_v0 }
 0x29f   : > { %v1625_v2 = vpop.f32.mrf.mxu0  ;;  %v1649_v3 = vpop.f32.mrf.mxu1 }
 0x2a0   : > { %v1036_v4 = vadd.f32 %v1625_v2, %v2480_v1  ;;  %v1116_v5 = vadd.f32 %v1649_v3, %v2480_v1 }
 0x2a1   : > { %v1030_v6 = vpop.f32.mrf.mxu0  ;;  %v1110_v7 = vpop.f32.mrf.mxu1 }
 0x2a2   : > { %1190 = vst [vmem:[%s2425_s29 + $0x8] sm:$0xff] %v1036_v4  ;;  %1206 = vst [vmem:[%s2425_s29 + $0x88] sm:$0xff] %v1116_v5  ;;  %v1031_v8 = vadd.f32 %v2480_v1, %v1030_v6  ;;  %v1111_v9 = vadd.f32 %v2480_v1, %v1110_v7 }
 0x2a3   : > { %v1628_v10 = vpop.f32.mrf.mxu0  ;;  %v1652_v11 = vpop.f32.mrf.mxu1 }
 0x2a4   : > { %1189 = vst [vmem:[%s2425_s29] sm:$0xff] %v1031_v8  ;;  %1205 = vst [vmem:[%s2425_s29 + $0x80] sm:$0xff] %v1111_v9  ;;  %v1046_v12 = vadd.f32 %v1628_v10, %v2480_v1  ;;  %v1126_v13 = vadd.f32 %v1652_v11, %v2480_v1 }
 0x2a5   : > { %v1040_v14 = vpop.f32.mrf.mxu0  ;;  %v1120_v15 = vpop.f32.mrf.mxu1 }
 0x2a6   : > { %1192 = vst [vmem:[%s2425_s29 + $0x18] sm:$0xff] %v1046_v12  ;;  %1208 = vst [vmem:[%s2425_s29 + $0x98] sm:$0xff] %v1126_v13  ;;  %v1041_v16 = vadd.f32 %v2480_v1, %v1040_v14  ;;  %v1121_v17 = vadd.f32 %v2480_v1, %v1120_v15 }
 0x2a7   : > { %v1631_v18 = vpop.f32.mrf.mxu0  ;;  %v1655_v19 = vpop.f32.mrf.mxu1 }
 0x2a8   : > { %1191 = vst [vmem:[%s2425_s29 + $0x10] sm:$0xff] %v1041_v16  ;;  %1207 = vst [vmem:[%s2425_s29 + $0x90] sm:$0xff] %v1121_v17  ;;  %v1056_v20 = vadd.f32 %v1631_v18, %v2480_v1  ;;  %v1136_v21 = vadd.f32 %v1655_v19, %v2480_v1 }
 0x2a9   : > { %v1050_v22 = vpop.f32.mrf.mxu0  ;;  %v1130_v23 = vpop.f32.mrf.mxu1 }
 0x2aa   : > { %1194 = vst [vmem:[%s2425_s29 + $0x28] sm:$0xff] %v1056_v20  ;;  %1210 = vst [vmem:[%s2425_s29 + $0xa8] sm:$0xff] %v1136_v21  ;;  %v1051_v24 = vadd.f32 %v2480_v1, %v1050_v22  ;;  %v1131_v25 = vadd.f32 %v2480_v1, %v1130_v23 }
 0x2ab   : > { %v1634_v26 = vpop.f32.mrf.mxu0  ;;  %v1658_v27 = vpop.f32.mrf.mxu1 }
 0x2ac   : > { %1193 = vst [vmem:[%s2425_s29 + $0x20] sm:$0xff] %v1051_v24  ;;  %1209 = vst [vmem:[%s2425_s29 + $0xa0] sm:$0xff] %v1131_v25  ;;  %v1066_v28 = vadd.f32 %v1634_v26, %v2480_v1  ;;  %v1146_v29 = vadd.f32 %v1658_v27, %v2480_v1 }
 0x2ad   : > { %v1060_v30 = vpop.f32.mrf.mxu0  ;;  %v1140_v31 = vpop.f32.mrf.mxu1 }
 0x2ae   : > { %1196 = vst [vmem:[%s2425_s29 + $0x38] sm:$0xff] %v1066_v28  ;;  %1212 = vst [vmem:[%s2425_s29 + $0xb8] sm:$0xff] %v1146_v29  ;;  %v1061_v32 = vadd.f32 %v2480_v1, %v1060_v30  ;;  %v1141_v33 = vadd.f32 %v2480_v1, %v1140_v31 }
 0x2af   : > { %v1637_v34 = vpop.f32.mrf.mxu0  ;;  %v1661_v35 = vpop.f32.mrf.mxu1 }
 0x2b0   : > { %1195 = vst [vmem:[%s2425_s29 + $0x30] sm:$0xff] %v1061_v32  ;;  %1211 = vst [vmem:[%s2425_s29 + $0xb0] sm:$0xff] %v1141_v33  ;;  %v1076_v36 = vadd.f32 %v1637_v34, %v2480_v1  ;;  %v1156_v37 = vadd.f32 %v1661_v35, %v2480_v1 }
 0x2b1   : > { %v1070_v38 = vpop.f32.mrf.mxu0  ;;  %v1150_v39 = vpop.f32.mrf.mxu1 }
 0x2b2   : > { %1198 = vst [vmem:[%s2425_s29 + $0x48] sm:$0xff] %v1076_v36  ;;  %1214 = vst [vmem:[%s2425_s29 + $0xc8] sm:$0xff] %v1156_v37  ;;  %v1071_v40 = vadd.f32 %v2480_v1, %v1070_v38  ;;  %v1151_v41 = vadd.f32 %v2480_v1, %v1150_v39 }
 0x2b3   : > { %v1640_v42 = vpop.f32.mrf.mxu0  ;;  %v1664_v43 = vpop.f32.mrf.mxu1 }
 0x2b4   : > { %1197 = vst [vmem:[%s2425_s29 + $0x40] sm:$0xff] %v1071_v40  ;;  %1213 = vst [vmem:[%s2425_s29 + $0xc0] sm:$0xff] %v1151_v41  ;;  %v1086_v44 = vadd.f32 %v1640_v42, %v2480_v1  ;;  %v1166_v45 = vadd.f32 %v1664_v43, %v2480_v1 }
 0x2b5   : > { %v1080_v46 = vpop.f32.mrf.mxu0  ;;  %v1160_v47 = vpop.f32.mrf.mxu1 }
 0x2b6   : > { %1200 = vst [vmem:[%s2425_s29 + $0x58] sm:$0xff] %v1086_v44  ;;  %1216 = vst [vmem:[%s2425_s29 + $0xd8] sm:$0xff] %v1166_v45  ;;  %v1081_v48 = vadd.f32 %v2480_v1, %v1080_v46  ;;  %v1161_v49 = vadd.f32 %v2480_v1, %v1160_v47 }
 0x2b7   : > { %v1643_v50 = vpop.f32.mrf.mxu0  ;;  %v1667_v51 = vpop.f32.mrf.mxu1 }
 0x2b8   : > { %1199 = vst [vmem:[%s2425_s29 + $0x50] sm:$0xff] %v1081_v48  ;;  %1215 = vst [vmem:[%s2425_s29 + $0xd0] sm:$0xff] %v1161_v49  ;;  %v1096_v52 = vadd.f32 %v1643_v50, %v2480_v1  ;;  %v1176_v53 = vadd.f32 %v1667_v51, %v2480_v1 }
 0x2b9   : > { %v1090_v54 = vpop.f32.mrf.mxu0  ;;  %v1170_v55 = vpop.f32.mrf.mxu1 }
 0x2ba   : > { %1202 = vst [vmem:[%s2425_s29 + $0x68] sm:$0xff] %v1096_v52  ;;  %1218 = vst [vmem:[%s2425_s29 + $0xe8] sm:$0xff] %v1176_v53  ;;  %v1091_v56 = vadd.f32 %v2480_v1, %v1090_v54  ;;  %v1171_v57 = vadd.f32 %v2480_v1, %v1170_v55 }
 0x2bb   : > { %v1646_v58 = vpop.f32.mrf.mxu0  ;;  %v1670_v59 = vpop.f32.mrf.mxu1 }
 0x2bc   : > { %1201 = vst [vmem:[%s2425_s29 + $0x60] sm:$0xff] %v1091_v56  ;;  %1217 = vst [vmem:[%s2425_s29 + $0xe0] sm:$0xff] %v1171_v57  ;;  %v1106_v60 = vadd.f32 %v1646_v58, %v2480_v1  ;;  %v1186_v61 = vadd.f32 %v1670_v59, %v2480_v1 }
 0x2bd   : > { %v1100_v62 = vpop.f32.mrf.mxu0  ;;  %v1180_v63 = vpop.f32.mrf.mxu1 }
 0x2be   : > { %1204 = vst [vmem:[%s2425_s29 + $0x78] sm:$0xff] %v1106_v60  ;;  %1220 = vst [vmem:[%s2425_s29 + $0xf8] sm:$0xff] %v1186_v61  ;;  %v1101_v0 = vadd.f32 %v2480_v1, %v1100_v62  ;;  %v1181_v2 = vadd.f32 %v2480_v1, %v1180_v63 }
 0x2c0   : > { %1203 = vst [vmem:[%s2425_s29 + $0x70] sm:$0xff] %v1101_v0  ;;  %1219 = vst [vmem:[%s2425_s29 + $0xf0] sm:$0xff] %v1181_v2 }
 0x2c1 PF: > { %s2695_s14 = sld [smem:[#allocation17_spill]]  ;;  %s1235_s6 = sshll.u32 %s2425_s29, 4  ;;  %s2553_s6 = int_to_ptr.vmem [resolvable:$true] %s1235_s6 }
 0x2c2   : > { %s2697_s2 = sld [smem:[#allocation21_spill]]  ;;  %s2557_s9 = scalar_lea.sflag [#allocation5], %s284_s18 }
 0x2c3   : > { %s2698_s3 = sld [smem:[#allocation27_spill]]  ;;  %s2015_s16 = scalar_lea.vmem %s2553_s6, 4096 }
 0x2c4   : > { %p2016_p10 = scmp.ne.s32.totalorder %s2553_s6, %s2015_s16  ;;  %s2178_s7 = smov [#allocation9]  }
 0x2c5   : > { %s2019_s8 = sshll.u32 %s2178_s7, 4  ;;  %s2020_s8 = int_to_ptr.vmem [resolvable:$false] %s2019_s8 }
 0x2c6   : > { %s2021_s12 = scalar_lea.vmem %s2020_s8, 8192  ;;  %p2022_p9 = scmp.lt.s32.totalorder %s2553_s6, %s2020_s8 }
 0x2c7   : > { %s1430_s25 = sshll.u32 %s2695_s14, 12  ;;  %p2023_p12 = scmp.lt.s32.totalorder %s2021_s12, %s2015_s16 }
 0x2c8   : > { %p2699_p0 = scmp.ne.s32.totalorder %s2697_s2, 0 }
 0x2c9   : > { %s2550_s10 = scalar_lea.hbm %s2698_s3, %s1430_s25  ;;  %p2024_p6 = por %p2023_p12, %p2022_p9 }
 0x2ca   : > { %p2017_p8 = pnand %p2016_p10, %p2699_p0 }
 0x2cc   : > { %p2018_p5 = pneg %p2017_p8 }
 0x2ce   : > { %p2025_p7 = pnand %p2024_p6, %p2018_p5 }
 0x2d0   : > { %2028 = shalt.err (!%p2025_p7)
}
 0x2d1   : > { %s2029_s18 = scalar_lea.hbm %s2550_s10, 4096  ;;  %s2033_s30 = scalar_lea.hbm %s2698_s3, 8192 }
 0x2d2   : > { %p2030_p4 = scmp.ne.s32.totalorder %s2550_s10, %s2029_s18  ;;  %p2034_p1 = scmp.lt.s32.totalorder %s2550_s10, %s2698_s3 }
 0x2d3   : > { %p2035_p3 = scmp.lt.s32.totalorder %s2033_s30, %s2029_s18 }
 0x2d4   : > { %p2031_p13 = pnand %p2030_p4, %p2699_p0 }
 0x2d5   : > { %p2036_p11 = por %p2035_p3, %p2034_p1 }
 0x2d6   : > { %p2032_p2 = pneg %p2031_p13 }
 0x2d8   : > { %p2037_p10 = pnand %p2036_p11, %p2032_p2 }
 0x2da   : > { %2040 = shalt.err (!%p2037_p10)
}
 0x2db   : > { %s2179_s25 = smov 128   ;;  %s2180_s24 = smov 8  }
 0x2dc   : > { %1727 = dma.vmem_to_hbm [thread:$0]  (%p2699_p0), %s2553_s6, 4096, %s2550_s10, %s2557_s9, %s2179_s25, %s2179_s25, %s2180_s24  }
 0x2dd PF: > { %s2700_s0 = sld [smem:[#allocation14_spill]]  ;;  %p1747_p8 = scmp.ge.s32.totalorder %s2167_s28, 2 }
 0x2de   : > { %s2701_s16 = sld [smem:[#allocation22_spill]] }
 0x2e3   : > { %s1250_s7 = sand.u32 1, %s2700_s0  }
 0x2e4   : > { %p2702_p5 = scmp.ne.s32.totalorder %s2701_s16, 0  ;;  %s1251_s8 = scalar_lea.sflag [#allocation5], %s1250_s7 }
 0x2e6   : > { %p1741_p9 = pnand %p1747_p8, %p2702_p5 }
 0x2e8   : > { %p1742_p12 = pneg %p1741_p9 }
 0x2ea   : > { %2110 = dma.done.wait (%p1742_p12), %s1251_s8, 4096  }
 0x2eb   : > { %2112 = vsyncadd (%p1742_p12), %s1251_s8, 4294963200  ;;  %s23_s28 = sadd.s32 1, %s2167_s28   ;;  %s2704_s2 = sld [smem:[#allocation15_spill]] }
 0x2ec   : > { %p2585_p6 = scmp.ge.s32.totalorder %s23_s28, 6   ;;  %s2705_s10 = smov %s2352_s15 }
 0x2ed   : > { %s2706_s6 = sld [smem:[#allocation23_spill]]  ;;  %s2708_s16 = smov %s2123_s17 }
 0x2ee   : > { %s2709_s17 = smov %s2705_s10  ;;  %s2710_s18 = smov %s2131_s19 }
 0x2ef   : > { %s2711_s19 = smov %s2135_s20  ;;  %s2712_s20 = smov %s2381_s11 }
 0x2f0   : > { %s2713_s21 = smov %s2143_s22  ;;  %s2714_s22 = smov %s2147_s23 }
 0x2f1   : > { %s2707_s15 = smov %s2704_s2  ;;  %s2715_s23 = smov %s2355_s4 }
 0x2f2   : > { %s2716_s24 = smov %s2159_s26  ;;  %s2717_s25 = smov %s2163_s27 }
 0x2f3   : > { %s2718_s26 = smov %s2706_s6  ;;  %s2719_s27 = smov %s2725_s13 }
 0x2f4   :  { %22 = sbr.rel (!%p2585_p6) target bundleno = 17 (0x11), region = 106 }
 0x2f9   :  { %1256 = vsyncpa [#allocation4], 1 }
 0x2fa   :  { %1258 = vsyncpa [#allocation4 + $0x1], 1 }
 0x2fb   :  { %1259 = vsyncpa [#allocation7], 1 }
 0x2fc   :  { %1261 = vsyncpa [#allocation7 + $0x1], 1 }
 0x2fd   :  { %1262 = vsyncpa [#allocation5], 1 }
 0x2fe   :  { %1264 = vsyncpa [#allocation5 + $0x1], 1 }

</bundles_post_ra>
